<compile_context>
chip_gen: v5e
topology: v5e:2x2
jax: 0.10.0
libtpu: 0.0.40
codegen_flags: <defaults>
</compile_context>

<pallas_src>
import functools
import math

import jax
import jax.numpy as jnp
from jax.experimental import pallas as pl
from jax.experimental.pallas import tpu as pltpu

_LANES = 128
_SUBLANES = 8
# ~2 MiB per block: >85% of HBM roofline on v5e/v6e/v7x, and 4 x 2 MiB of
# double-buffered in+out VMEM fits every generation's default scoped limit.
_TARGET_BLOCK_BYTES = 2 * 1024 * 1024

# Pure clip/select activations: no need for the f32 upcast (bf16-native on
# v6e/v7x VPU, halves vreg footprint and removes two cast passes).
_NATIVE_DTYPE_ACTS = ("relu", "relu6", "leakyrelu", "hardtanh")

_SUPPORTED_ACTS = (
    "relu", "relu6", "gelu", "sigmoid", "tanh", "silu", "swish",
    "leakyrelu", "elu", "softplus", "hardtanh",
)


def _apply_act(x, act):
    """Elementwise activation matching torch.nn.modules.activation defaults."""
    if act is None:
        return x
    a = act.lower()

    if a in _NATIVE_DTYPE_ACTS:
        # Compute directly in the input dtype.
        if a == "relu":
            return jnp.maximum(x, 0)
        if a == "relu6":
            return jnp.clip(x, 0, 6)
        if a == "leakyrelu":            # torch default negative_slope=0.01
            return jnp.where(x >= 0, x, x * 0.01)
        return jnp.clip(x, -1, 1)       # hardtanh

    xf = x.astype(jnp.float32)
    if a == "gelu":                     # torch default: exact erf formulation
        y = 0.5 * xf * (1.0 + jax.lax.erf(xf * (1.0 / math.sqrt(2.0))))
    elif a == "sigmoid":
        y = 1.0 / (1.0 + jnp.exp(-xf))
    elif a == "tanh":
        y = jnp.tanh(xf)
    elif a in ("silu", "swish"):
        y = xf * (1.0 / (1.0 + jnp.exp(-xf)))
    elif a == "elu":                    # torch default alpha=1.0
        y = jnp.where(xf > 0.0, xf, jnp.exp(xf) - 1.0)
    elif a == "softplus":               # torch default beta=1, threshold=20
        y = jnp.where(xf > 20.0, xf, jnp.log1p(jnp.exp(jnp.minimum(xf, 20.0))))
    else:
        raise KeyError(f"{act} is not supported by this Pallas Activation kernel")
    return y.astype(x.dtype)


def _activation_kernel(x_ref, o_ref, *, act):
    o_ref[...] = _apply_act(x_ref[...], act)


def _round_up(v, m):
    return ((v + m - 1) // m) * m


def _run_slab(slab, act):
    """Apply activation to a (rows, 128) slab with large pipelined blocks."""
    rows, lanes = slab.shape
    itemsize = jnp.dtype(slab.dtype).itemsize

    if rows <= _SUBLANES:
        block_rows = rows               # full-extent block (always legal)
    else:
        target_rows = max(256, _TARGET_BLOCK_BYTES // (lanes * itemsize))
        target_rows = _round_up(target_rows, _SUBLANES)
        block_rows = min(target_rows, _round_up(rows, _SUBLANES))
        # Mid-size inputs: prefer >= 2 grid steps so the parallel axis can be
        # split across v7x's two TensorCores.
        if rows >= 512:
            block_rows = min(block_rows, _round_up(pl.cdiv(rows, 2), _SUBLANES))

    grid = (pl.cdiv(rows, block_rows),)  # last block is partial & masked

    return pl.pallas_call(
        functools.partial(_activation_kernel, act=act),
        out_shape=jax.ShapeDtypeStruct((rows, lanes), slab.dtype),
        grid_spec=pltpu.PrefetchScalarGridSpec(
            num_scalar_prefetch=0,
            grid=grid,
            in_specs=[pl.BlockSpec((block_rows, lanes), lambda i: (i, 0))],
            out_specs=pl.BlockSpec((block_rows, lanes), lambda i: (i, 0)),
        ),
        compiler_params=pltpu.CompilerParams(
            dimension_semantics=("parallel",),
            vmem_limit_bytes=32 * 1024 * 1024,
        ),
    )(slab)


class Activation:
    """Pallas equivalent of the PyTorch Activation module."""

    def __init__(self, act=None):
        self._act = act
        if act is not None and act.lower() not in _SUPPORTED_ACTS:
            raise KeyError(
                f"{act} does not exist in the supported set {_SUPPORTED_ACTS}")

    def __call__(self, x):
        if self._act is None:
            return x                     # identity path, no kernel launch

        orig_shape = x.shape
        total = math.prod(orig_shape) if orig_shape else 1
        if total == 0:
            return x

        flat = jnp.ravel(x)

        if total % _LANES == 0:
            # Fast path: no pad, no trailing slice -> no extra HBM passes.
            slab = flat.reshape(total // _LANES, _LANES)
            out = _run_slab(slab, self._act)
            return out.reshape(orig_shape)

        # Ragged tail: pad to a lane multiple (<= 127 extra elements).
        # TODO(synk): mask the tail in-kernel to avoid the pad/slice passes;
        # unaligned totals are rare for conv-style activations.
        padded_total = _round_up(total, _LANES)
        flat = jnp.pad(flat, (0, padded_total - total))
        slab = flat.reshape(padded_total // _LANES, _LANES)
        out = _run_slab(slab, self._act)
        return out.reshape(-1)[:total].reshape(orig_shape)


if __name__ == "__main__":
    key = jax.random.PRNGKey(0)
    k1, k2 = jax.random.split(key)

    # NCHW input consistent with typical use of this layer after a conv.
    x = jax.random.normal(k1, (2, 4, 16, 16), dtype=jnp.float32)
    # Unaligned total (105 elements) exercises the ragged-tail fallback.
    x_ragged = jax.random.normal(k2, (3, 5, 7), dtype=jnp.float32)
    # bf16 exercises the native-dtype (no-upcast) path.
    x_bf16 = x.astype(jnp.bfloat16)

    ok = True

    for act_name in ["relu", "gelu", "sigmoid", "tanh", "silu", None]:
        layer = Activation(act_name)
        y = jax.block_until_ready(layer(x))
        y_ref = _apply_act(x, act_name)
        if y.shape != x.shape or y.dtype != x.dtype:
            ok = False
        if not jnp.allclose(y, y_ref, atol=1e-5, rtol=1e-5):
            ok = False

    y = jax.block_until_ready(Activation("relu")(x_ragged))
    if y.shape != x_ragged.shape or not jnp.allclose(
            y, _apply_act(x_ragged, "relu"), atol=1e-5, rtol=1e-5):
        ok = False

    y = jax.block_until_ready(Activation("relu")(x_bf16))
    if y.dtype != jnp.bfloat16 or not jnp.allclose(
            y.astype(jnp.float32),
            _apply_act(x_bf16, "relu").astype(jnp.float32),
            atol=1e-2, rtol=1e-2):
        ok = False

    if ok:
        print("KERNEL_OK")
</pallas_src>

<mosaic_0001>
module attributes {stable_mosaic.version = 11 : i64} {
  func.func @_activation_kernel(%arg0: i32, %arg1: memref<16x128xf32, #tpu.memory_space<vmem>>, %arg2: memref<16x128xf32, #tpu.memory_space<vmem>>) attributes {dimension_semantics = [#tpu.dimension_semantics<parallel>], iteration_bounds = array<i64: 1>, scalar_prefetch = 0 : i64, scratch_operands = 0 : i64, tpu.core_type = #tpu.core_type<tc>, window_params = [{transform_indices = @transform_0, window_bounds = array<i64: 16, 128>}, {transform_indices = @transform_1, window_bounds = array<i64: 16, 128>}]} {
    %c0 = arith.constant 0 : index
    %c0_0 = arith.constant 0 : index
    %0 = vector.load %arg1[%c0, %c0_0] : memref<16x128xf32, #tpu.memory_space<vmem>>, vector<16x128xf32>
    %cst = arith.constant 0.000000e+00 : f32
    %1 = vector.broadcast %cst : f32 to vector<16x128xf32>
    %2 = arith.maximumf %0, %1 : vector<16x128xf32>
    %c0_1 = arith.constant 0 : index
    %c0_2 = arith.constant 0 : index
    %3 = vector.load %arg2[%c0_1, %c0_2] : memref<16x128xf32, #tpu.memory_space<vmem>>, vector<16x128xf32>
    tpu.vector_store %arg2[%c0_1, %c0_2], %2 {strides = array<i32>} : memref<16x128xf32, #tpu.memory_space<vmem>>, vector<16x128xf32>,
    return
  }
  func.func @transform_0(%arg0: i32) -> (i32, i32) {
    %c0_i32 = arith.constant 0 : i32
    %c0_i32_0 = arith.constant 0 : i32
    return %arg0, %c0_i32 : i32, i32
  }
  func.func @transform_1(%arg0: i32) -> (i32, i32) {
    %c0_i32 = arith.constant 0 : i32
    %c0_i32_0 = arith.constant 0 : i32
    return %arg0, %c0_i32 : i32, i32
  }
}

</mosaic_0001>

<bundles_post_ra>
// kernel: tpu_custom_call.1
= control target key start
LH: loop header
LB: loop body
LE: loop exit
PB: predicated region body
PF: predicated region fallthrough
CT: control target
= control target key end

     0   :  { %6 = vsyncpa [#allocation3], 0  ;;  %s126_s0 = inlined_call_operand.hbm [shape: f32[16,128], index: 0, kind: input, shape index: {}]   ;;  %s127_s1 = inlined_call_operand.hbm [shape: f32[16,128], index: 1, kind: output, shape index: {}]  }
   0x1   :  { %7 = vsyncpa [#allocation4], 0  ;;  %s12_s8 = sshll.u32 %s126_s0, 4  ;;  %s106_s9 = smov [#allocation2]   ;;  %s13_s8 = int_to_ptr.hbm [resolvable:$true] %s12_s8 }
   0x2   :  { %s14_s10 = sshll.u32 %s106_s9, 4  ;;  %s107_s11 = smov 128   ;;  %s15_s10 = int_to_ptr.vmem [resolvable:$true] %s14_s10 }
   0x3   :  { %s108_s12 = smov 8  }
   0x4   :  { %20 = dma.hbm_to_vmem [thread:$0]  %s13_s8, 256, %s15_s10, [#allocation3], %s107_s11, %s107_s11, %s108_s12  }
   0x5   :  { %102 = dma.done.wait [#allocation3], 256  }
   0x6   :  { %103 = vsyncadd [#allocation3], 4294967040  ;;  %s109_s13 = smov [#allocation5]   ;;  %s37_s17 = sshll.u32 %s127_s1, 4  ;;  %v25_v0 = vld [vmem:[#allocation2] sm:$0xff]  ;;  %v26_v1 = vld [vmem:[#allocation2 + $0x8] sm:$0xff]  ;;  %s38_s17 = int_to_ptr.hbm [resolvable:$true] %s37_s17 }
   0x7   :  { %s35_s14 = sshll.u32 %s109_s13, 4  ;;  %v27_v2 = vmax.f32 %v25_v0, 0.0  ;;  %v28_v3 = vmax.f32 %v26_v1, 0.0  ;;  %s36_s14 = int_to_ptr.vmem [resolvable:$true] %s35_s14 }
   0x9   :  { %29 = vst [vmem:[#allocation5] sm:$0xff] %v27_v2 }
   0xa   :  { %30 = vst [vmem:[#allocation5 + $0x8] sm:$0xff] %v28_v3 }
   0xb   :  { %43 = dma.vmem_to_hbm [thread:$0]  %s36_s14, 256, %s38_s17, [#allocation4], %s107_s11, %s107_s11, %s108_s12  }
   0xc   :  { %104 = dma.done.wait [#allocation4], 256  }
   0xd   :  { %105 = vsyncadd [#allocation4], 4294967040 }
   0xe   :  { %48 = vsyncpa [#allocation3], 1 }
   0xf   :  { %49 = vsyncpa [#allocation4], 1 }

</bundles_post_ra>
